<compile_context>
chip_gen: v7x
topology: tpu7x:2x2x1
jax: 0.10.0
libtpu: 0.0.40
codegen_flags: <defaults>
</compile_context>

<pallas_src>
import jax
import jax.numpy as jnp
from jax.experimental import pallas as pl
from jax.experimental.pallas import tpu as pltpu

EPS = 1e-5
PAD = 128            # lane width: every feature dim is zero-padded to this


def _round_up(n, m):
    return ((n + m - 1) // m) * m


# ----------------------------------------------------------------------------
# Pallas kernel: build the one-hot(+cont) input block in-register, then a pure
# dot + bias (+ ReLU) chain over the packed, lane-padded bf16 weight slab.
# ----------------------------------------------------------------------------
def make_mlp_kernel(n_layers, cat_offsets, cont_offset, n_cont, compute_dtype):
    cat_offsets = tuple(int(o) for o in cat_offsets)
    cont_offset = int(cont_offset)

    def kernel(xcat_ref, xcont_ref, w_ref, b_ref, o_ref):
        tb = o_ref.shape[0]
        lane = jax.lax.broadcasted_iota(jnp.int32, (tb, PAD), 1)

        # Fused "embedding gather + concat + pad": one-hot encode the categorical
        # codes (the tables are folded into w_ref[0]) and drop the raw continuous
        # features into their lanes (bn_cont is folded into w_ref[0] / b_ref[0]).
        idx = xcat_ref[...]                                    # (tb, n_cat) int32
        xb = jnp.zeros((tb, PAD), jnp.float32)
        for c, off in enumerate(cat_offsets):
            xb = xb + (lane == (off + idx[:, c:c + 1])).astype(jnp.float32)
        xc = xcont_ref[...]                                    # (tb, n_cont) f32
        for j in range(n_cont):
            xb = xb + jnp.where(lane == (cont_offset + j), xc[:, j:j + 1], 0.0)

        # MLP chain (all BatchNorms already folded into the Linears).
        h = xb
        for l in range(n_layers):                              # static unroll
            h = jnp.dot(h.astype(compute_dtype), w_ref[l],     # bf16 x bf16 -> f32 acc
                        preferred_element_type=jnp.float32) + b_ref[l]
            if l < n_layers - 1:
                h = jnp.maximum(h, 0.0)                        # ReLU (f32)
        o_ref[...] = h                                         # lane-dense (tb,128) store

    return kernel


# ----------------------------------------------------------------------------
# One-time constant fold (all math in f32, cast to bf16 at the end):
#   * bn_cont           -> continuous rows of W0 and bias0
#   * hidden BatchNorms -> the following Linear
#   * embedding tables  -> W0 via one-hot:  gather(E,i) @ W0_emb == onehot(i) @ (E @ W0_emb)
# Pack everything into one (L,128,128) weight slab + (L,1,128) bias slab.
# ----------------------------------------------------------------------------
def fold_params(params, compute_dtype=jnp.bfloat16):
    n_cont = params["bn_cont"][0].shape[1]
    emb_tables = params["emb_tables"]
    cat_szs = [int(t.shape[0]) for t in emb_tables]
    emb_dims = [int(t.shape[1]) for t in emb_tables]
    n_emb = sum(emb_dims)
    n_onehot = sum(cat_szs)
    # TODO(synk): the one-hot fold assumes small categorical cardinalities (true for
    # this exercise); very large tables would need an in-kernel gather path instead.
    assert n_onehot + n_cont <= PAD, "one-hot + continuous features must fit in 128 lanes"

    w0, b0, _ = params["hidden"][0]                            # (n_emb + n_cont, h0)
    g, bb, m, v = params["bn_cont"]
    scale = (g / jnp.sqrt(v + EPS)).reshape(-1)                # (n_cont,)
    shift = bb.reshape(-1) - m.reshape(-1) * scale

    w0_emb, w0_cont = w0[:n_emb], w0[n_emb:]
    rows, r = [], 0
    for tbl, nf in zip(emb_tables, emb_dims):                  # block-diag(E) @ W0_emb
        rows.append(tbl.astype(jnp.float32) @ w0_emb[r:r + nf])
        r += nf
    folded_w = [jnp.concatenate(rows + [scale[:, None] * w0_cont], axis=0)]
    folded_b = [b0.reshape(-1) + shift @ w0_cont]

    # later layers: fold hidden layer i's BN into layer i+1's Linear
    later = [(w, b) for (w, b, _) in params["hidden"][1:]]
    later.append((params["w_final"], params["b_final"]))
    bns = [bn for (_, _, bn) in params["hidden"]]              # BN of layer i feeds i+1
    for (w, b), (g1, b1, m1, v1) in zip(later, bns):
        s1 = (g1 / jnp.sqrt(v1 + EPS)).reshape(-1)
        sh1 = b1.reshape(-1) - m1.reshape(-1) * s1
        folded_w.append(s1[:, None] * w)
        folded_b.append(b.reshape(-1) + sh1 @ w)

    L = len(folded_w)
    assert all(w.shape[1] <= PAD for w in folded_w)
    w_all = jnp.zeros((L, PAD, PAD), jnp.float32)
    b_all = jnp.zeros((L, 1, PAD), jnp.float32)
    for i, (w, b) in enumerate(zip(folded_w, folded_b)):
        w_all = w_all.at[i, : w.shape[0], : w.shape[1]].set(w)
        b_all = b_all.at[i, 0, : b.shape[0]].set(b)

    cat_offsets, off = [], 0
    for s in cat_szs:
        cat_offsets.append(off)
        off += s

    return {
        "w_all": w_all.astype(compute_dtype),    # fold in f32, cast after
        "b_all": b_all,                          # bias / accumulation stay f32
        "cat_offsets": tuple(cat_offsets),
        "cont_offset": n_onehot,
        "n_cont": n_cont,
        "out_sz": int(params["w_final"].shape[1]),
        "compute_dtype": compute_dtype,
    }


# ----------------------------------------------------------------------------
# Batch tiling plan: big tiles (default 1024), sized from B (no dead-tile padding),
# and >= 2 "parallel" blocks for large batches so both v7x TensorCores are used.
# ----------------------------------------------------------------------------
def _plan_batch(B, target_block):
    n_blocks = max(1, -(-B // target_block))                   # ceil
    if n_blocks == 1 and B >= 1024:
        n_blocks = 2                                           # v7x: use both TCs
    block_b = _round_up(-(-B // n_blocks), 8)                  # f32 sublane multiple
    return n_blocks, block_b


def tabular_forward(x_cat, x_cont, folded, *, block_b=1024):
    """Eval-mode forward.  x_cat: (B, n_cat) int, x_cont: (B, n_cont) float."""
    B, n_cat = x_cat.shape
    n_cont = folded["n_cont"]
    w_all, b_all = folded["w_all"], folded["b_all"]
    L = w_all.shape[0]

    n_blocks, tb = _plan_batch(B, max(8, block_b))
    b_pad = n_blocks * tb
    x_cat = x_cat.astype(jnp.int32)
    x_cont = x_cont.astype(jnp.float32)
    if b_pad != B:                                             # tiny (B,6)/(B,2) pad only
        x_cat = jnp.pad(x_cat, ((0, b_pad - B), (0, 0)))
        x_cont = jnp.pad(x_cont, ((0, b_pad - B), (0, 0)))

    kernel = make_mlp_kernel(L, folded["cat_offsets"], folded["cont_offset"],
                             n_cont, folded["compute_dtype"])

    out_pad = pl.pallas_call(
        kernel,
        out_shape=jax.ShapeDtypeStruct((b_pad, PAD), jnp.float32),
        grid=(n_blocks,),
        in_specs=[
            pl.BlockSpec((tb, n_cat), lambda i: (i, 0)),       # per-tile int codes
            pl.BlockSpec((tb, n_cont), lambda i: (i, 0)),      # per-tile cont feats
            # constant index_map -> fetched once, resident across all grid steps
            pl.BlockSpec((L, PAD, PAD), lambda i: (0, 0, 0)),  # bf16 weight slab
            pl.BlockSpec((L, 1, PAD), lambda i: (0, 0, 0)),    # f32 bias slab
        ],
        out_specs=pl.BlockSpec((tb, PAD), lambda i: (i, 0)),   # lane-dense store
        compiler_params=pltpu.CompilerParams(
            dimension_semantics=("parallel",),
            vmem_limit_bytes=32 * 1024 * 1024),                # big tiles OK on v5e too
    )(x_cat, x_cont, w_all, b_all)

    # TODO(synk): this trailing [:B, :out_sz] slice could be fused into the consumer.
    return out_pad[:B, : folded["out_sz"]]


# ----------------------------------------------------------------------------
# Deterministic parameter construction (mirrors TabularModel.__init__)
# ----------------------------------------------------------------------------
def make_params(key, emb_szs, n_cont, out_sz, layers):
    def nrm(k, shape, scale=0.1):
        return (scale * jax.random.normal(k, shape)).astype(jnp.float32)

    keys = iter(jax.random.split(key, 256))

    emb_tables = [nrm(next(keys), (ni, nf), 1.0) for ni, nf in emb_szs]
    n_emb = sum(nf for _, nf in emb_szs)

    def bn_params(n):
        g = (1.0 + 0.05 * jax.random.normal(next(keys), (1, n))).astype(jnp.float32)
        b = nrm(next(keys), (1, n), 0.05)
        m = nrm(next(keys), (1, n), 0.1)
        v = (0.5 + jax.random.uniform(next(keys), (1, n))).astype(jnp.float32)
        return (g, b, m, v)

    params = {"emb_tables": emb_tables, "bn_cont": bn_params(n_cont)}

    hidden = []
    n_in = n_emb + n_cont
    for h in layers:
        w = nrm(next(keys), (n_in, h))       # (in, out) — nn.Linear weight pre-transposed
        b = nrm(next(keys), (1, h), 0.05)
        hidden.append((w, b, bn_params(h)))
        n_in = h
    params["hidden"] = hidden
    params["w_final"] = nrm(next(keys), (n_in, out_sz))
    params["b_final"] = nrm(next(keys), (1, out_sz), 0.05)
    return params


# ----------------------------------------------------------------------------
# References for checking:
#   reference_forward : true f32 eval-mode semantics (gather + BN + MLP)
#   folded_reference  : same folded bf16 slab as the kernel (tight kernel check)
# ----------------------------------------------------------------------------
def reference_forward(x_cat, x_cont, params):
    embs = [tbl[x_cat[:, i]] for i, tbl in enumerate(params["emb_tables"])]
    x_emb = jnp.concatenate(embs, axis=1)

    g, b, m, v = params["bn_cont"]
    xc = (x_cont - m) / jnp.sqrt(v + EPS) * g + b
    h = jnp.concatenate([x_emb, xc], axis=1)

    for (w, bias, (g1, bb1, m1, v1)) in params["hidden"]:
        h = h @ w + bias
        h = jnp.maximum(h, 0.0)
        h = (h - m1) / jnp.sqrt(v1 + EPS) * g1 + bb1
    return h @ params["w_final"] + params["b_final"]


def folded_reference(x_cat, x_cont, folded):
    B = x_cat.shape[0]
    x = jnp.zeros((B, PAD), jnp.float32)
    for c, off in enumerate(folded["cat_offsets"]):
        x = x.at[jnp.arange(B), off + x_cat[:, c]].set(1.0)
    co = folded["cont_offset"]
    x = x.at[:, co:co + folded["n_cont"]].set(x_cont.astype(jnp.float32))
    w_all, b_all = folded["w_all"], folded["b_all"]
    h = x
    L = w_all.shape[0]
    for l in range(L):
        h = jnp.dot(h.astype(w_all.dtype), w_all[l],
                    preferred_element_type=jnp.float32) + b_all[l]
        if l < L - 1:
            h = jnp.maximum(h, 0.0)
    return h[:, : folded["out_sz"]]


# ----------------------------------------------------------------------------
if __name__ == "__main__":
    key = jax.random.PRNGKey(0)

    # six categorical columns (sex, education, marital-status, workclass,
    # occupation, income) with synthetic cardinalities, as in the exercise
    cat_szs = [2, 16, 7, 9, 15, 2]
    emb_szs = [(s, min(50, (s + 1) // 2)) for s in cat_szs]
    n_cont, out_sz, layers = 2, 2, [32, 16]

    k_param, k_cat, k_cont = jax.random.split(key, 3)
    params = make_params(k_param, emb_szs, n_cont, out_sz, layers)
    folded = fold_params(params)          # one-time f32 fold -> bf16 slab + lane-pad

    def make_inputs(kc, kx, batch):
        x_cat = jnp.stack(
            [jax.random.randint(jax.random.fold_in(kc, i), (batch,), 0, s)
             for i, s in enumerate(cat_szs)], axis=1).astype(jnp.int32)
        x_cont = jax.random.normal(kx, (batch, n_cont), dtype=jnp.float32)
        return x_cat, x_cont

    def check(xc_, xn_, out, tag):
        ref_exact = folded_reference(xc_, xn_, folded)   # same bf16 weights as kernel
        ref_true = reference_forward(xc_, xn_, params)   # true f32 eval-mode math
        assert jnp.allclose(out, ref_exact, atol=2e-3, rtol=2e-3), f"{tag}: kernel mismatch"
        assert jnp.allclose(out, ref_true, atol=5e-2, rtol=5e-2), f"{tag}: bf16 drift too large"

    # small batch -> single (8-row) block
    x_cat, x_cont = make_inputs(k_cat, k_cont, 8)
    out = jax.block_until_ready(tabular_forward(x_cat, x_cont, folded))
    assert out.shape == (8, out_sz)
    check(x_cat, x_cont, out, "small")

    # ragged batch -> one 520-row block (no dead-row padding up to a 1024 tile)
    k2a, k2b = jax.random.split(jax.random.fold_in(key, 7))
    x_cat2, x_cont2 = make_inputs(k2a, k2b, 520)
    out2 = jax.block_until_ready(tabular_forward(x_cat2, x_cont2, folded))
    assert out2.shape == (520, out_sz)
    check(x_cat2, x_cont2, out2, "ragged")

    # large batch -> two 1024-row "parallel" blocks (both v7x TensorCores busy)
    k3a, k3b = jax.random.split(jax.random.fold_in(key, 11))
    x_cat3, x_cont3 = make_inputs(k3a, k3b, 2048)
    out3 = jax.block_until_ready(tabular_forward(x_cat3, x_cont3, folded))
    assert out3.shape == (2048, out_sz)
    check(x_cat3, x_cont3, out3, "large")

    print("KERNEL_OK")
</pallas_src>

<mosaic_0001>
module attributes {stable_mosaic.version = 11 : i64} {
  func.func @kernel(%arg0: i32, %arg1: memref<8x6xi32, #tpu.memory_space<vmem>>, %arg2: memref<8x2xf32, #tpu.memory_space<vmem>>, %arg3: memref<3x128x128xbf16, #tpu.memory_space<vmem>>, %arg4: memref<3x1x128xf32, #tpu.memory_space<vmem>>, %arg5: memref<8x128xf32, #tpu.memory_space<vmem>>) attributes {dimension_semantics = [#tpu.dimension_semantics<parallel>], iteration_bounds = array<i64: 1>, scalar_prefetch = 0 : i64, scratch_operands = 0 : i64, tpu.core_type = #tpu.core_type<tc>, window_params = [{transform_indices = @transform_0, window_bounds = array<i64: 8, 6>}, {transform_indices = @transform_1, window_bounds = array<i64: 8, 2>}, {pipeline_mode = #tpu.pipeline_mode<synchronous>, transform_indices = @transform_2, window_bounds = array<i64: 3, 128, 128>}, {pipeline_mode = #tpu.pipeline_mode<synchronous>, transform_indices = @transform_3, window_bounds = array<i64: 3, 1, 128>}, {transform_indices = @transform_4, window_bounds = array<i64: 8, 128>}]} {
    %0 = tpu.iota {dimensions = array<i32: 1>} : vector<8x128xi32>
    %c0 = arith.constant 0 : index
    %c0_0 = arith.constant 0 : index
    %1 = vector.load %arg1[%c0, %c0_0] : memref<8x6xi32, #tpu.memory_space<vmem>>, vector<8x6xi32>
    %cst = arith.constant 0.000000e+00 : f32
    %2 = vector.broadcast %cst : f32 to vector<8x128xf32>
    %3 = vector.extract_strided_slice %1 {offsets = [0, 0], sizes = [8, 1], strides = [1, 1]} : vector<8x6xi32> to vector<8x1xi32>
    %c0_i32 = arith.constant 0 : i32
    %4 = vector.broadcast %c0_i32 : i32 to vector<8x1xi32>
    %5 = arith.addi %4, %3 : vector<8x1xi32>
    %6 = vector.broadcast %5 : vector<8x1xi32> to vector<8x128xi32>
    %7 = arith.cmpi eq, %0, %6 : vector<8x128xi32>
    %8 = arith.extui %7 : vector<8x128xi1> to vector<8x128xi32>
    %9 = arith.sitofp %8 : vector<8x128xi32> to vector<8x128xf32>
    %10 = arith.addf %2, %9 : vector<8x128xf32>
    %11 = vector.extract_strided_slice %1 {offsets = [0, 1], sizes = [8, 1], strides = [1, 1]} : vector<8x6xi32> to vector<8x1xi32>
    %c2_i32 = arith.constant 2 : i32
    %12 = vector.broadcast %c2_i32 : i32 to vector<8x1xi32>
    %13 = arith.addi %12, %11 : vector<8x1xi32>
    %14 = vector.broadcast %13 : vector<8x1xi32> to vector<8x128xi32>
    %15 = arith.cmpi eq, %0, %14 : vector<8x128xi32>
    %16 = arith.extui %15 : vector<8x128xi1> to vector<8x128xi32>
    %17 = arith.sitofp %16 : vector<8x128xi32> to vector<8x128xf32>
    %18 = arith.addf %10, %17 : vector<8x128xf32>
    %19 = vector.extract_strided_slice %1 {offsets = [0, 2], sizes = [8, 1], strides = [1, 1]} : vector<8x6xi32> to vector<8x1xi32>
    %c18_i32 = arith.constant 18 : i32
    %20 = vector.broadcast %c18_i32 : i32 to vector<8x1xi32>
    %21 = arith.addi %20, %19 : vector<8x1xi32>
    %22 = vector.broadcast %21 : vector<8x1xi32> to vector<8x128xi32>
    %23 = arith.cmpi eq, %0, %22 : vector<8x128xi32>
    %24 = arith.extui %23 : vector<8x128xi1> to vector<8x128xi32>
    %25 = arith.sitofp %24 : vector<8x128xi32> to vector<8x128xf32>
    %26 = arith.addf %18, %25 : vector<8x128xf32>
    %27 = vector.extract_strided_slice %1 {offsets = [0, 3], sizes = [8, 1], strides = [1, 1]} : vector<8x6xi32> to vector<8x1xi32>
    %c25_i32 = arith.constant 25 : i32
    %28 = vector.broadcast %c25_i32 : i32 to vector<8x1xi32>
    %29 = arith.addi %28, %27 : vector<8x1xi32>
    %30 = vector.broadcast %29 : vector<8x1xi32> to vector<8x128xi32>
    %31 = arith.cmpi eq, %0, %30 : vector<8x128xi32>
    %32 = arith.extui %31 : vector<8x128xi1> to vector<8x128xi32>
    %33 = arith.sitofp %32 : vector<8x128xi32> to vector<8x128xf32>
    %34 = arith.addf %26, %33 : vector<8x128xf32>
    %35 = vector.extract_strided_slice %1 {offsets = [0, 4], sizes = [8, 1], strides = [1, 1]} : vector<8x6xi32> to vector<8x1xi32>
    %c34_i32 = arith.constant 34 : i32
    %36 = vector.broadcast %c34_i32 : i32 to vector<8x1xi32>
    %37 = arith.addi %36, %35 : vector<8x1xi32>
    %38 = vector.broadcast %37 : vector<8x1xi32> to vector<8x128xi32>
    %39 = arith.cmpi eq, %0, %38 : vector<8x128xi32>
    %40 = arith.extui %39 : vector<8x128xi1> to vector<8x128xi32>
    %41 = arith.sitofp %40 : vector<8x128xi32> to vector<8x128xf32>
    %42 = arith.addf %34, %41 : vector<8x128xf32>
    %43 = vector.extract_strided_slice %1 {offsets = [0, 5], sizes = [8, 1], strides = [1, 1]} : vector<8x6xi32> to vector<8x1xi32>
    %c49_i32 = arith.constant 49 : i32
    %44 = vector.broadcast %c49_i32 : i32 to vector<8x1xi32>
    %45 = arith.addi %44, %43 : vector<8x1xi32>
    %46 = vector.broadcast %45 : vector<8x1xi32> to vector<8x128xi32>
    %47 = arith.cmpi eq, %0, %46 : vector<8x128xi32>
    %48 = arith.extui %47 : vector<8x128xi1> to vector<8x128xi32>
    %49 = arith.sitofp %48 : vector<8x128xi32> to vector<8x128xf32>
    %50 = arith.addf %42, %49 : vector<8x128xf32>
    %c0_1 = arith.constant 0 : index
    %c0_2 = arith.constant 0 : index
    %51 = vector.load %arg2[%c0_1, %c0_2] : memref<8x2xf32, #tpu.memory_space<vmem>>, vector<8x2xf32>
    %c51_i32 = arith.constant 51 : i32
    %52 = vector.broadcast %c51_i32 : i32 to vector<8x128xi32>
    %53 = arith.cmpi eq, %0, %52 : vector<8x128xi32>
    %54 = vector.extract_strided_slice %51 {offsets = [0, 0], sizes = [8, 1], strides = [1, 1]} : vector<8x2xf32> to vector<8x1xf32>
    %cst_3 = arith.constant 0.000000e+00 : f32
    %55 = vector.shape_cast %54 : vector<8x1xf32> to vector<8x1xf32>
    %56 = vector.broadcast %55 : vector<8x1xf32> to vector<8x128xf32>
    %57 = vector.broadcast %cst_3 : f32 to vector<8x128xf32>
    %58 = arith.select %53, %56, %57 : vector<8x128xi1>, vector<8x128xf32>
    %59 = arith.addf %50, %58 : vector<8x128xf32>
    %c52_i32 = arith.constant 52 : i32
    %60 = vector.broadcast %c52_i32 : i32 to vector<8x128xi32>
    %61 = arith.cmpi eq, %0, %60 : vector<8x128xi32>
    %62 = vector.extract_strided_slice %51 {offsets = [0, 1], sizes = [8, 1], strides = [1, 1]} : vector<8x2xf32> to vector<8x1xf32>
    %cst_4 = arith.constant 0.000000e+00 : f32
    %63 = vector.shape_cast %62 : vector<8x1xf32> to vector<8x1xf32>
    %64 = vector.broadcast %63 : vector<8x1xf32> to vector<8x128xf32>
    %65 = vector.broadcast %cst_4 : f32 to vector<8x128xf32>
    %66 = arith.select %61, %64, %65 : vector<8x128xi1>, vector<8x128xf32>
    %67 = arith.addf %59, %66 : vector<8x128xf32>
    %68 = arith.truncf %67 : vector<8x128xf32> to vector<8x128xbf16>
    %c0_5 = arith.constant 0 : index
    %c0_6 = arith.constant 0 : index
    %c0_7 = arith.constant 0 : index
    %69 = vector.load %arg3[%c0_5, %c0_6, %c0_7] : memref<3x128x128xbf16, #tpu.memory_space<vmem>>, vector<1x128x128xbf16>
    %70 = vector.shape_cast %69 : vector<1x128x128xbf16> to vector<128x128xbf16>
    %cst_8 = arith.constant dense<0.000000e+00> : vector<8x128xf32>
    %71 = tpu.matmul %68, %70, %cst_8 {dimension_numbers = #tpu.dot_dimension_numbers<[1], [0], [0], [1], [0, 0, 1, 1], [], []>} : vector<8x128xbf16>, vector<128x128xbf16>, vector<8x128xf32> -> vector<8x128xf32>
    %c0_9 = arith.constant 0 : index
    %c0_10 = arith.constant 0 : index
    %c0_11 = arith.constant 0 : index
    %72 = vector.load %arg4[%c0_9, %c0_10, %c0_11] : memref<3x1x128xf32, #tpu.memory_space<vmem>>, vector<1x1x128xf32>
    %73 = vector.shape_cast %72 : vector<1x1x128xf32> to vector<1x128xf32>
    %74 = vector.broadcast %73 : vector<1x128xf32> to vector<8x128xf32>
    %75 = arith.addf %71, %74 : vector<8x128xf32>
    %cst_12 = arith.constant 0.000000e+00 : f32
    %76 = vector.broadcast %cst_12 : f32 to vector<8x128xf32>
    %77 = arith.maximumf %75, %76 : vector<8x128xf32>
    %78 = arith.truncf %77 : vector<8x128xf32> to vector<8x128xbf16>
    %c1 = arith.constant 1 : index
    %c0_13 = arith.constant 0 : index
    %c0_14 = arith.constant 0 : index
    %79 = vector.load %arg3[%c1, %c0_13, %c0_14] : memref<3x128x128xbf16, #tpu.memory_space<vmem>>, vector<1x128x128xbf16>
    %80 = vector.shape_cast %79 : vector<1x128x128xbf16> to vector<128x128xbf16>
    %cst_15 = arith.constant dense<0.000000e+00> : vector<8x128xf32>
    %81 = tpu.matmul %78, %80, %cst_15 {dimension_numbers = #tpu.dot_dimension_numbers<[1], [0], [0], [1], [0, 0, 1, 1], [], []>} : vector<8x128xbf16>, vector<128x128xbf16>, vector<8x128xf32> -> vector<8x128xf32>
    %c1_16 = arith.constant 1 : index
    %c0_17 = arith.constant 0 : index
    %c0_18 = arith.constant 0 : index
    %82 = vector.load %arg4[%c1_16, %c0_17, %c0_18] : memref<3x1x128xf32, #tpu.memory_space<vmem>>, vector<1x1x128xf32>
    %83 = vector.shape_cast %82 : vector<1x1x128xf32> to vector<1x128xf32>
    %84 = vector.broadcast %83 : vector<1x128xf32> to vector<8x128xf32>
    %85 = arith.addf %81, %84 : vector<8x128xf32>
    %cst_19 = arith.constant 0.000000e+00 : f32
    %86 = vector.broadcast %cst_19 : f32 to vector<8x128xf32>
    %87 = arith.maximumf %85, %86 : vector<8x128xf32>
    %88 = arith.truncf %87 : vector<8x128xf32> to vector<8x128xbf16>
    %c2 = arith.constant 2 : index
    %c0_20 = arith.constant 0 : index
    %c0_21 = arith.constant 0 : index
    %89 = vector.load %arg3[%c2, %c0_20, %c0_21] : memref<3x128x128xbf16, #tpu.memory_space<vmem>>, vector<1x128x128xbf16>
    %90 = vector.shape_cast %89 : vector<1x128x128xbf16> to vector<128x128xbf16>
    %cst_22 = arith.constant dense<0.000000e+00> : vector<8x128xf32>
    %91 = tpu.matmul %88, %90, %cst_22 {dimension_numbers = #tpu.dot_dimension_numbers<[1], [0], [0], [1], [0, 0, 1, 1], [], []>} : vector<8x128xbf16>, vector<128x128xbf16>, vector<8x128xf32> -> vector<8x128xf32>
    %c2_23 = arith.constant 2 : index
    %c0_24 = arith.constant 0 : index
    %c0_25 = arith.constant 0 : index
    %92 = vector.load %arg4[%c2_23, %c0_24, %c0_25] : memref<3x1x128xf32, #tpu.memory_space<vmem>>, vector<1x1x128xf32>
    %93 = vector.shape_cast %92 : vector<1x1x128xf32> to vector<1x128xf32>
    %94 = vector.broadcast %93 : vector<1x128xf32> to vector<8x128xf32>
    %95 = arith.addf %91, %94 : vector<8x128xf32>
    %c0_26 = arith.constant 0 : index
    %c0_27 = arith.constant 0 : index
    %96 = vector.load %arg5[%c0_26, %c0_27] : memref<8x128xf32, #tpu.memory_space<vmem>>, vector<8x128xf32>
    tpu.vector_store %arg5[%c0_26, %c0_27], %95 {strides = array<i32>} : memref<8x128xf32, #tpu.memory_space<vmem>>, vector<8x128xf32>,
    return
  }
  func.func @transform_0(%arg0: i32) -> (i32, i32) {
    %c0_i32 = arith.constant 0 : i32
    %c0_i32_0 = arith.constant 0 : i32
    return %arg0, %c0_i32 : i32, i32
  }
  func.func @transform_1(%arg0: i32) -> (i32, i32) {
    %c0_i32 = arith.constant 0 : i32
    %c0_i32_0 = arith.constant 0 : i32
    return %arg0, %c0_i32 : i32, i32
  }
  func.func @transform_2(%arg0: i32) -> (i32, i32, i32) {
    %c0_i32 = arith.constant 0 : i32
    %c0_i32_0 = arith.constant 0 : i32
    %c0_i32_1 = arith.constant 0 : i32
    %c0_i32_2 = arith.constant 0 : i32
    return %c0_i32, %c0_i32_0, %c0_i32_1 : i32, i32, i32
  }
  func.func @transform_3(%arg0: i32) -> (i32, i32, i32) {
    %c0_i32 = arith.constant 0 : i32
    %c0_i32_0 = arith.constant 0 : i32
    %c0_i32_1 = arith.constant 0 : i32
    %c0_i32_2 = arith.constant 0 : i32
    return %c0_i32, %c0_i32_0, %c0_i32_1 : i32, i32, i32
  }
  func.func @transform_4(%arg0: i32) -> (i32, i32) {
    %c0_i32 = arith.constant 0 : i32
    %c0_i32_0 = arith.constant 0 : i32
    return %arg0, %c0_i32 : i32, i32
  }
}

</mosaic_0001>

<bundles_post_ra>
// kernel: tpu_custom_call.1
= control target key start
LH: loop header
LB: loop body
LE: loop exit
PB: predicated region body
PF: predicated region fallthrough
CT: control target
= control target key end

     0   :  { %9 = vsyncpa [#allocation3], 0  ;;  %s784_s0 = inlined_call_operand.vmem [shape: s32[8,6], index: 0, kind: input, shape index: {}]   ;;  %s785_s1 = inlined_call_operand.vmem [shape: f32[8,2], index: 1, kind: input, shape index: {}]   ;;  %s786_s2 = inlined_call_operand.hbm [shape: bf16[3,128,128], index: 2, kind: input, shape index: {}]   ;;  %s787_s3 = inlined_call_operand.vmem [shape: f32[3,1,128], index: 3, kind: input, shape index: {}]   ;;  %s788_s4 = inlined_call_operand.hbm [shape: f32[8,128], index: 4, kind: output, shape index: {}]  }
   0x1   :  { %10 = vsyncpa [#allocation4], 0  ;;  %s672_s15 = smov [#allocation2]   ;;  %s624_s19 = scalar_lea.hbm %s786_s2, 3072 }
   0x2   :  { %s20_s16 = sshll.u32 %s672_s15, 4  ;;  %p625_p0 = scmp.ne.s32.totalorder %s786_s2, %s624_s19  ;;  %s21_s16 = int_to_ptr.vmem [resolvable:$true] %s20_s16 }
   0x3   :  { %p628_p1 = scmp.lt.u32.totalorder %s624_s19, %s786_s2 }
   0x5   :  { %p630_p2 = pnand %p628_p1, %p625_p0 }
   0x7   :  { %633 = shalt.err (!%p630_p2)
}
   0x8   :  { %s634_s24 = scalar_lea.vmem %s21_s16, 3072  ;;  %p639_p4 = scmp.lt.s32.totalorder %s21_s16, %s21_s16 }
   0x9   :  { %p635_p3 = scmp.ne.s32.totalorder %s21_s16, %s634_s24  ;;  %p640_p5 = scmp.lt.s32.totalorder %s634_s24, %s634_s24 }
   0xb   :  { %p641_p6 = por %p640_p5, %p639_p4 }
   0xd   :  { %p642_p7 = pnand %p641_p6, %p635_p3 }
   0xf   :  { %645 = shalt.err (!%p642_p7)
}
  0x10   :  { %s673_s25 = smov 64   ;;  %s674_s26 = smov 4  }
  0x11   :  { %26 = dma.hbm_to_vmem [thread:$0]  %s786_s2, 3072, %s21_s16, [#allocation3], %s673_s25, %s673_s25, %s674_s26  }
  0x12   :  { %668 = dma.done.wait [#allocation3], 3072  }
  0x13   :  { %669 = vsyncadd [#allocation3], 4294964224  ;;  %v675_v0 = vmov 0   ;;  %v676_v1 = vmov 2   ;;  %v677_v2 = vmov 0.0   ;;  %v35_v3 = vld [vmem:[%s784_s0] sm:$0xff]  ;;  %v33_v28 = vlaneseq }
  0x14   :  { %591 = vset.pattern.permute.xlu0 %v675_v0  ;;  %593 = vset.pattern.permute.xlu1 %v676_v1  ;;  %v51_v4 = vadd.s32 18, %v35_v3  ;;  %v43_v5 = vadd.s32 2, %v35_v3  ;;  %v600_v6 = vld [vmem:[#allocation2] sm:$0xff]   ;;  %v59_v7 = vadd.s32 25, %v35_v3  ;;  %v67_v8 = vadd.s32 34, %v35_v3  ;;  %v601_v9 = vld [vmem:[#allocation2 + $0x8] sm:$0xff]  }
  0x15   :  { %519 = vmatprep.subr.bf16.mxu0 %v677_v2  ;;  %539 = vmatprep.subr.bf16.mxu1 %v677_v2  ;;  %v678_v10 = vmov 1   ;;  %v679_v11 = vmov 3   ;;  %v75_v12 = vadd.s32 49, %v35_v3  ;;  %v602_v13 = vld [vmem:[#allocation2 + $0x10] sm:$0xff]   ;;  %v680_v14 = vmov 5   ;;  %v603_v15 = vld [vmem:[#allocation2 + $0x18] sm:$0xff]  }
  0x16   :  { %37 = vperm.xlu0 %591, %v35_v3   ;;  %53 = vperm.xlu1 %593, %v51_v4   ;;  %v681_v16 = vmov 4   ;;  %v83_v17 = vld [vmem:[%s785_s1] sm:$0xff]  ;;  %v605_v19 = vld [vmem:[#allocation2 + $0x28] sm:$0xff]   ;;  %v606_v20 = vld [vmem:[#allocation2 + $0x30] sm:$0xff]   ;;  %vm682_vm0 = vmmov 0   ;;  %v34_v29 = vand.u32 127, %v33_v28 }
  0x17   :  { %520 = vmatpush3.bf16.msra.mxu0 %v600_v6  ;;  %v604_v18 = vld [vmem:[#allocation2 + $0x20] sm:$0xff]   ;;  %535 = vmatprep.mubr.msk.bf16.mxu0 %vm682_vm0, %v677_v2  ;;  %v607_v21 = vld [vmem:[#allocation2 + $0x38] sm:$0xff]   ;;  %v609_v23 = vld [vmem:[#allocation2 + $0x48] sm:$0xff]   ;;  %s683_s10 = smov [#allocation5]  }
  0x18   :  { %521 = vmatprep.subr.bf16.mxu0 %v677_v2  ;;  %555 = vmatprep.mubr.msk.bf16.mxu1 %vm682_vm0, %v677_v2  ;;  %v608_v22 = vld [vmem:[#allocation2 + $0x40] sm:$0xff]   ;;  %v610_v24 = vld [vmem:[#allocation2 + $0x50] sm:$0xff]   ;;  %v611_v25 = vld [vmem:[#allocation2 + $0x58] sm:$0xff]   ;;  %vm84_vm7 = vcmp.eq.s32.totalorder %v34_v29, 51  ;;  %vm92_vm8 = vcmp.eq.s32.totalorder %v34_v29, 52  ;;  %s448_s11 = sshll.u32 %s683_s10, 4  ;;  %s449_s11 = int_to_ptr.vmem [resolvable:$true] %s448_s11 }
  0x19   :  { %540 = vmatpush3.bf16.msra.mxu1 %v608_v22  ;;  %v612_v26 = vld [vmem:[#allocation2 + $0x60] sm:$0xff]   ;;  %v613_v27 = vld [vmem:[#allocation2 + $0x68] sm:$0xff]   ;;  %v614_v54 = vld [vmem:[#allocation2 + $0x70] sm:$0xff]   ;;  %s646_s12 = scalar_lea.vmem %s449_s11, 128  ;;  %p651_p9 = scmp.lt.s32.totalorder %s449_s11, %s449_s11 }
  0x1a   :  { %592 = vset.pattern.permute.xlu0 %v678_v10  ;;  %594 = vset.pattern.permute.xlu1 %v679_v11  ;;  %v615_v55 = vld [vmem:[#allocation2 + $0x78] sm:$0xff]   ;;  %v616_v56 = vld [vmem:[#allocation2 + $0x80] sm:$0xff]   ;;  %v617_v57 = vld [vmem:[#allocation2 + $0x88] sm:$0xff]   ;;  %p647_p8 = scmp.ne.s32.totalorder %s449_s11, %s646_s12  ;;  %p652_p10 = scmp.lt.s32.totalorder %s646_s12, %s646_s12 }
  0x1b   :  { %45 = vperm.xlu0 %592, %v43_v5   ;;  %61 = vperm.xlu1 %594, %v59_v7   ;;  %v618_v58 = vld [vmem:[#allocation2 + $0x90] sm:$0xff]   ;;  %v619_v59 = vld [vmem:[#allocation2 + $0x98] sm:$0xff]   ;;  %v620_v60 = vld [vmem:[#allocation2 + $0xa0] sm:$0xff]  }
  0x1c   :  { %522 = vmatpush3.bf16.msra.mxu0 %v601_v9  ;;  %541 = vmatprep.subr.bf16.mxu1 %v677_v2  ;;  %v621_v61 = vld [vmem:[#allocation2 + $0xa8] sm:$0xff]   ;;  %v463_v62 = vld [vmem:[%s787_s3] ss:$0 sm:$0xff]  ;;  %v622_v7 = vld [vmem:[#allocation2 + $0xb0] sm:$0xff]   ;;  %p653_p11 = por %p652_p10, %p651_p9 }
  0x1d   :  { %523 = vmatprep.subr.bf16.mxu0 %v677_v2  ;;  %542 = vmatpush3.bf16.msra.mxu1 %v609_v23  ;;  %v473_v9 = vld [vmem:[%s787_s3 + $0x1] ss:$0 sm:$0xff] }
  0x1e   :  { %543 = vmatprep.subr.bf16.mxu1 %v677_v2  ;;  %p654_p12 = pnand %p653_p11, %p647_p8 }
  0x1f   :  { %596 = vset.pattern.permute.xlu0 %v680_v14  ;;  %595 = vset.pattern.permute.xlu1 %v681_v16 }
  0x20   :  { %77 = vperm.xlu0 %596, %v75_v12   ;;  %524 = vmatpush3.bf16.msra.mxu0 %v602_v13 }
  0x21   :  { %69 = vperm.xlu1 %595, %v67_v8   ;;  %525 = vmatprep.subr.bf16.mxu0 %v677_v2  ;;  %v623_v8 = vld [vmem:[#allocation2 + $0xb8] sm:$0xff]  }
  0x22   :  { %544 = vmatpush3.bf16.msra.mxu1 %v610_v24 }
  0x23   :  { %545 = vmatprep.subr.bf16.mxu1 %v677_v2 }
  0x24   :  { %599 = vset.pattern.permute.xlu0 %v678_v10  ;;  %526 = vmatpush3.bf16.msra.mxu0 %v603_v15 }
  0x25   :  { %597 = vset.pattern.permute.xlu1 %v675_v0  ;;  %527 = vmatprep.subr.bf16.mxu0 %v677_v2 }
  0x26   :  { %87 = vperm.xlu1 %597, %v83_v17   ;;  %546 = vmatpush3.bf16.msra.mxu1 %v611_v25 }
  0x27   :  { %547 = vmatprep.subr.bf16.mxu1 %v677_v2 }
  0x28   :  { %528 = vmatpush3.bf16.msra.mxu0 %v604_v18 }
  0x29   :  { %529 = vmatprep.subr.bf16.mxu0 %v677_v2 }
  0x2a   :  { %598 = vset.pattern.permute.xlu1 %v678_v10  ;;  %548 = vmatpush3.bf16.msra.mxu1 %v612_v26 }
  0x2b   :  { %94 = vperm.xlu1 %598, %v83_v17   ;;  %549 = vmatprep.subr.bf16.mxu1 %v677_v2  ;;  %v483_v17 = vld [vmem:[%s787_s3 + $0x2] ss:$0 sm:$0xff] }
  0x2c   :  { %530 = vmatpush3.bf16.msra.mxu0 %v605_v19 }
  0x2d   :  { %531 = vmatprep.subr.bf16.mxu0 %v677_v2 }
  0x2e   :  { %550 = vmatpush3.bf16.msra.mxu1 %v613_v27 }
  0x2f   :  { %551 = vmatprep.subr.bf16.mxu1 %v677_v2 }
  0x30   :  { %532 = vmatpush3.bf16.msra.mxu0 %v606_v20 }
  0x31   :  { %533 = vmatprep.subr.bf16.mxu0 %v677_v2 }
  0x32   :  { %552 = vmatpush3.bf16.msra.mxu1 %v614_v54 }
  0x33   :  { %553 = vmatprep.subr.bf16.mxu1 %v677_v2 }
  0x34   :  { %534 = vmatpush3.bf16.msra.mxu0 %v607_v21 }
  0x35   :  { %559 = vmatprep.subr.bf16.mxu0 %v677_v2 }
  0x36   :  { %554 = vmatpush3.bf16.msra.mxu1 %v615_v55 }
  0x95   :  { %v38_v30 = vpop.permute.xlu0 %37  ;;  %v54_v31 = vpop.permute.xlu1 %53 }
  0x96   :  { %vm39_vm1 = vcmp.eq.s32.totalorder %v34_v29, %v38_v30  ;;  %vm55_vm2 = vcmp.eq.s32.totalorder %v34_v29, %v54_v31 }
  0x97   :  { %v457_v32 = vsel %vm39_vm1, 1.0, %v677_v2  ;;  %v459_v37 = vsel %vm55_vm2, 1.0, %v677_v2 }
  0x9a   :  { %v46_v33 = vpop.permute.xlu0 %45  ;;  %v62_v35 = vpop.permute.xlu1 %61 }
  0x9b   :  { %vm47_vm3 = vcmp.eq.s32.totalorder %v34_v29, %v46_v33  ;;  %vm63_vm4 = vcmp.eq.s32.totalorder %v34_v29, %v62_v35 }
  0x9c   :  { %v458_v34 = vsel %vm47_vm3, 1.0, %v677_v2  ;;  %v460_v40 = vsel %vm63_vm4, 1.0, %v677_v2 }
  0x9d   :  { %v50_v36 = vadd.f32 %v458_v34, %v457_v32 }
  0x9f   :  { %v58_v38 = vadd.f32 %v459_v37, %v50_v36  ;;  %v78_v39 = vpop.permute.xlu0 %77 }
  0xa0   :  { %v70_v42 = vpop.permute.xlu1 %69  ;;  %vm79_vm5 = vcmp.eq.s32.totalorder %v34_v29, %v78_v39 }
  0xa1   :  { %v66_v41 = vadd.f32 %v460_v40, %v58_v38  ;;  %vm71_vm6 = vcmp.eq.s32.totalorder %v34_v29, %v70_v42  ;;  %v462_v45 = vsel %vm79_vm5, 1.0, %v677_v2 }
  0xa2   :  { %v461_v43 = vsel %vm71_vm6, 1.0, %v677_v2 }
  0xa3   :  { %v74_v44 = vadd.f32 %v461_v43, %v66_v41 }
  0xa5   :  { %v88_v46 = vpop.permute.xlu1 %87  ;;  %v82_v47 = vadd.f32 %v462_v45, %v74_v44 }
  0xa6   :  { %v90_v48 = vsel %vm84_vm7, %v88_v46, 0.0 }
  0xa7   :  { %v91_v49 = vadd.f32 %v90_v48, %v82_v47 }
  0xaa   :  { %v95_v50 = vpop.permute.xlu1 %94 }
  0xab   :  { %v97_v51 = vsel %vm92_vm8, %v95_v50, 0.0 }
  0xac   :  { %v98_v52 = vadd.f32 %v97_v51, %v91_v49 }
  0xae   :  { %v99_v53 = vpack.c.bf16 %v98_v52, %v98_v52 }
  0xb0   :  { %536 = vmatmul.mubr.bf16.vlgmr.msra.gmra.mrb[0].mxu0 %v99_v53 }
  0xb1   :  { %575 = vmatprep.mubr.msk.bf16.mxu0 %vm682_vm0, %v677_v2  ;;  %560 = vmatpush3.bf16.msra.mxu0 %v616_v56 }
  0xb2   :  { %561 = vmatprep.subr.bf16.mxu0 %v677_v2 }
  0xb5   :  { %562 = vmatpush3.bf16.msra.mxu0 %v617_v57 }
  0xb6   :  { %563 = vmatprep.subr.bf16.mxu0 %v677_v2 }
  0xb9   :  { %564 = vmatpush3.bf16.msra.mxu0 %v618_v58 }
  0xba   :  { %565 = vmatprep.subr.bf16.mxu0 %v677_v2 }
  0xbd   :  { %566 = vmatpush3.bf16.msra.mxu0 %v619_v59 }
  0xbe   :  { %567 = vmatprep.subr.bf16.mxu0 %v677_v2 }
  0xc1   :  { %568 = vmatpush3.bf16.msra.mxu0 %v620_v60 }
  0xc2   :  { %569 = vmatprep.subr.bf16.mxu0 %v677_v2 }
  0xc5   :  { %570 = vmatpush3.bf16.msra.mxu0 %v621_v61 }
  0xc6   :  { %571 = vmatprep.subr.bf16.mxu0 %v677_v2 }
  0xc9   :  { %572 = vmatpush3.bf16.msra.mxu0 %v622_v7 }
  0xca   :  { %573 = vmatprep.subr.bf16.mxu0 %v677_v2 }
  0xcd   :  { %574 = vmatpush3.bf16.msra.mxu0 %v623_v8 }
 0x183   :  { %v205_v63 = vpop.f32.mrb[0].mxu0 }
 0x184   :  { %v206_v0 = vadd.f32 %v463_v62, %v205_v63  ;;  %v537_v1 = vpop.f32.mrb[1].mxu0 }
 0x185   :  { %v208_v3 = vpop.f32.mrb[2].mxu0 }
 0x186   :  { %v211_v4 = vmax.f32 %v206_v0, 0.0  ;;  %v538_v5 = vpop.f32.mrb[3].mxu0 }
 0x188   :  { %v212_v6 = vpack.c.bf16 %v211_v4, %v211_v4 }
 0x18a   :  { %556 = vmatmul.mubr.bf16.vlgmr.msra.gmra.mrb[0].mxu1 %v212_v6 }
 0x25d   :  { %v320_v10 = vpop.f32.mrb[0].mxu1 }
 0x25e   :  { %v321_v11 = vadd.f32 %v473_v9, %v320_v10  ;;  %v557_v12 = vpop.f32.mrb[1].mxu1 }
 0x25f   :  { %v323_v13 = vpop.f32.mrb[2].mxu1 }
 0x260   :  { %v326_v14 = vmax.f32 %v321_v11, 0.0  ;;  %v558_v15 = vpop.f32.mrb[3].mxu1 }
 0x262   :  { %v327_v16 = vpack.c.bf16 %v326_v14, %v326_v14 }
 0x264   :  { %576 = vmatmul.mubr.bf16.vlgmr.msra.gmra.mrb[4].mxu0 %v327_v16 }
 0x337   :  { %v435_v2 = vpop.f32.mrb[4].mxu0 }
 0x338   :  { %v436_v18 = vadd.f32 %v483_v17, %v435_v2  ;;  %v577_v19 = vpop.f32.mrb[5].mxu0 }
 0x339   :  { %v438_v20 = vpop.f32.mrb[6].mxu0 }
 0x33a   :  { %441 = vst [vmem:[#allocation5] sm:$0xff] %v436_v18  ;;  %v578_v21 = vpop.f32.mrb[7].mxu0 }
 0x33b   :  { %657 = shalt.err (!%p654_p12)
}
 0x33c   :  { %s658_s3 = scalar_lea.hbm %s788_s4, 128 }
 0x33d   :  { %p659_p13 = scmp.ne.s32.totalorder %s788_s4, %s658_s3  ;;  %p662_p0 = scmp.lt.u32.totalorder %s658_s3, %s788_s4 }
 0x33f   :  { %p664_p1 = pnand %p662_p0, %p659_p13 }
 0x341   :  { %667 = shalt.err (!%p664_p1)
}
 0x342   :  { %451 = dma.vmem_to_hbm [thread:$0]  %s449_s11, 128, %s788_s4, [#allocation4]  }
 0x343   :  { %670 = dma.done.wait [#allocation4], 128  }
 0x344   :  { %671 = vsyncadd [#allocation4], 4294967168 }
 0x345   :  { %455 = vsyncpa [#allocation3], 1 }
 0x346   :  { %456 = vsyncpa [#allocation4], 1 }

</bundles_post_ra>
